<compile_context>
chip_gen: v6e
topology: v6e:2x2x1
jax: 0.10.0
libtpu: 0.0.40
codegen_flags: <defaults>
</compile_context>

<pallas_src>
import jax
import jax.numpy as jnp
from jax import lax
from jax.experimental import pallas as pl
from jax.experimental.pallas import tpu as pltpu


def _round_up(x, m):
    return ((x + m - 1) // m) * m


def _vmem_budget():
    """Return (tile working-set budget, Mosaic scoped-vmem limit), generation aware."""
    cap = 128 * 1024 * 1024                      # v5e / v6e fallback (v7x reports 64 MiB)
    try:
        cap = int(pltpu.get_tpu_info().vmem_capacity_bytes)
    except Exception:
        pass
    return int(cap * 0.55), int(cap * 0.75)


def _select_tiles(tn_req, tv_req, V, E, c_item, o_item, budget):
    """Pick (tn, tv, tk) so the double-buffered working set fits `budget` bytes."""
    tn = max(8, _round_up(tn_req, 8))
    tv = max(128, min(_round_up(tv_req, 128), _round_up(V, 128)))
    tk = E                                       # prefer E untiled (no reduction axis)

    def footprint(tn_, tv_, tk_):
        return (2 * tv_ * tk_ * c_item           # weight tile, double-buffered
                + 2 * tn_ * tk_ * c_item         # activation tile, double-buffered
                + 2 * tv_ * 4                    # bias tile
                + 2 * tn_ * tv_ * o_item         # output tile, double-buffered
                + tn_ * tv_ * 4)                 # f32 accumulator scratch

    # Shrink order: V tile first (keeps E untiled and the weight resident across N),
    # then N tile, then tile E (only needed for very large embedding dims).
    while footprint(tn, tv, tk) > budget:
        if tv > 1024:
            tv = max(1024, (tv // 2) // 128 * 128)
        elif tn > 256:
            tn = max(256, (tn // 2) // 8 * 8)
        elif tk > 1024:
            tk = max(1024, _round_up(tk // 2, 128))
        elif tv > 128:
            tv = max(128, (tv // 2) // 128 * 128)
        elif tn > 8:
            tn = max(8, (tn // 2) // 8 * 8)
        else:
            break
    return tn, tv, tk


def _decoder_kernel(x_ref, w_ref, b_ref, o_ref, acc_ref):
    # x_ref   : (tn, tk)  activation tile (compute dtype, e.g. bf16)
    # w_ref   : (tv, tk)  decoder-weight tile (row-major torch.nn.Linear layout)
    # b_ref   : (1, tv)   bias tile (f32)
    # o_ref   : (tn, tv)  logits tile
    # acc_ref : (tn, tv)  f32 accumulator (VMEM scratch, persists across the E axis)
    k = pl.program_id(2)

    @pl.when(k == 0)
    def _():
        acc_ref[...] = jnp.zeros_like(acc_ref)

    acc_ref[...] += lax.dot_general(
        x_ref[...], w_ref[...],
        dimension_numbers=(((1,), (1,)), ((), ())),   # contract E on both; no transpose
        preferred_element_type=jnp.float32,
    )

    @pl.when(k == pl.num_programs(2) - 1)
    def _():
        o_ref[...] = (acc_ref[...] + b_ref[...]).astype(o_ref.dtype)


def make_linear_model(weight, bias, *, tn=512, tv=2048,
                      compute_dtype=jnp.bfloat16, logits_dtype=jnp.float32,
                      unpad_vocab=True):
    """Build forward(input_ids, inputs_embeds=None) for LinearModel (tie_weights=True).

    Parameter prep (dtype cast + V/E padding) happens ONCE here, not per forward call.
    compute_dtype=bf16 is the production path (f32 accumulation on the MXU); pass
    compute_dtype=f32 for exact PyTorch semantics.  unpad_vocab=False keeps vocab-padded
    logits (skips a full (N, V) copy) -- padded columns are zero and must be masked.
    """
    V, E = weight.shape
    assert bias.shape == (V,)
    c_item = jnp.dtype(compute_dtype).itemsize
    o_item = jnp.dtype(logits_dtype).itemsize

    budget, vmem_limit = _vmem_budget()
    tn_sel, tv_sel, tk_sel = _select_tiles(tn, tv, V, E, c_item, o_item, budget)
    v_pad = _round_up(V, tv_sel)
    e_pad = _round_up(E, tk_sel)

    # --- one-time weight / bias preparation (hoisted out of the forward) ----------
    w_p = weight.astype(compute_dtype)
    if (v_pad, e_pad) != (V, E):
        w_p = jnp.pad(w_p, ((0, v_pad - V), (0, e_pad - E)))
    b_p = bias.astype(jnp.float32)
    if v_pad != V:
        b_p = jnp.pad(b_p, (0, v_pad - V))
    b_p = b_p.reshape(1, v_pad)

    def _decode(x):                                   # x: (N, e_pad), compute dtype
        N = x.shape[0]
        tn_eff = min(tn_sel, _round_up(N, 8))         # small N -> single full-N block
        n_pad = _round_up(N, tn_eff)
        if n_pad != N:
            x = jnp.pad(x, ((0, n_pad - N), (0, 0)))
        grid = (v_pad // tv_sel, n_pad // tn_eff, e_pad // tk_sel)

        out = pl.pallas_call(
            _decoder_kernel,
            out_shape=jax.ShapeDtypeStruct((n_pad, v_pad), logits_dtype),
            grid_spec=pltpu.PrefetchScalarGridSpec(
                num_scalar_prefetch=0,
                grid=grid,
                in_specs=[
                    # activations: change with inner N axis (and E axis if tiled)
                    pl.BlockSpec((tn_eff, tk_sel), lambda j, i, k: (i, k)),
                    # weight rows: outer V axis -> resident across inner N loop when
                    # E is untiled (the common case), i.e. streamed from HBM once.
                    pl.BlockSpec((tv_sel, tk_sel), lambda j, i, k: (j, k)),
                    pl.BlockSpec((1, tv_sel),      lambda j, i, k: (0, j)),
                ],
                out_specs=pl.BlockSpec((tn_eff, tv_sel), lambda j, i, k: (i, j)),
                scratch_shapes=[pltpu.VMEM((tn_eff, tv_sel), jnp.float32)],
            ),
            compiler_params=pltpu.CompilerParams(
                # Only the V axis is "parallel": megacore (v7x) shards disjoint vocab
                # halves instead of doubling weight HBM traffic by sharding N.
                dimension_semantics=("parallel", "arbitrary", "arbitrary"),
                vmem_limit_bytes=vmem_limit,
            ),
        )(x, w_p, b_p)

        if n_pad != N:
            out = out[:N]
        if unpad_vocab and v_pad != V:
            out = out[:, :V]
        return out

    def forward(input_ids, inputs_embeds=None):
        if inputs_embeds is None:
            lead = input_ids.shape
            ids = input_ids.reshape(-1)
            # Encoder: embedding gather from the already-prepared (cast + padded) tied
            # weight.  Note: jnp.take clamps out-of-range ids instead of raising.
            # TODO(synk): fuse the gather into the pallas_call (scalar-prefetched ids +
            # in-kernel row DMA) to skip the (N, E) activation HBM round trip.
            x = jnp.take(w_p, ids, axis=0)            # (N, e_pad), compute dtype
        else:
            lead = inputs_embeds.shape[:-1]
            x = inputs_embeds.reshape(-1, E).astype(compute_dtype)
            if e_pad != E:
                x = jnp.pad(x, ((0, 0), (0, e_pad - E)))
        logits = _decode(x)
        return logits.reshape(*lead, logits.shape[-1])

    return forward


if __name__ == "__main__":
    # Small, forward-consistent shapes.
    B, S = 2, 8            # batch, sequence length
    V, E = 128, 32         # vocab_size, embedding_size

    key = jax.random.PRNGKey(0)
    k_ids, k_w, k_b = jax.random.split(key, 3)

    # Deterministic parameter init (shapes follow the PyTorch __init__).
    weight = jax.random.normal(k_w, (V, E), dtype=jnp.float32)        # nn.Embedding ~ N(0,1)
    bound = 1.0 / (E ** 0.5)
    bias = jax.random.uniform(k_b, (V,), dtype=jnp.float32,
                              minval=-bound, maxval=bound)            # nn.Linear bias init
    input_ids = jax.random.randint(k_ids, (B, S), 0, V, dtype=jnp.int32)

    ids_flat = input_ids.reshape(-1)

    # --- production path: bf16 operands, f32 accumulation / logits ----------------
    fwd = make_linear_model(weight, bias)              # prep hoisted out of the forward
    logits = jax.block_until_ready(fwd(input_ids))
    assert logits.shape == (B, S, V)

    # Reference with matching bf16 operands, f32 accumulation.
    w_bf = weight.astype(jnp.bfloat16).astype(jnp.float32)
    ref_bf = (w_bf[ids_flat] @ w_bf.T + bias).reshape(B, S, V)
    assert jnp.allclose(logits, ref_bf, atol=1e-3, rtol=1e-3)

    # Loose check against pure-f32 PyTorch semantics (documented bf16 deviation).
    ref_f32 = (weight[ids_flat] @ weight.T + bias).reshape(B, S, V)
    assert jnp.allclose(logits, ref_f32, atol=1.5e-1, rtol=5e-2)

    # --- exact-semantics path: f32 operands end-to-end ----------------------------
    fwd_f32 = make_linear_model(weight, bias, compute_dtype=jnp.float32)
    logits_f32 = jax.block_until_ready(fwd_f32(input_ids))
    assert jnp.allclose(logits_f32, ref_f32, atol=1e-5, rtol=1e-5)

    # inputs_embeds path (matches the PyTorch forward signature).
    emb = weight[ids_flat].reshape(B, S, E)
    logits_emb = jax.block_until_ready(fwd_f32(input_ids, inputs_embeds=emb))
    assert jnp.allclose(logits_emb, ref_f32, atol=1e-5, rtol=1e-5)

    # --- non-128-multiple vocab: exercises V padding + final unpad slice ----------
    V2 = 100
    w2 = weight[:V2]
    b2 = bias[:V2]
    ids2 = jnp.clip(input_ids, 0, V2 - 1)
    fwd2 = make_linear_model(w2, b2, compute_dtype=jnp.float32)
    out2 = jax.block_until_ready(fwd2(ids2))
    ref2 = (w2[ids2.reshape(-1)] @ w2.T + b2).reshape(B, S, V2)
    assert out2.shape == (B, S, V2)
    assert jnp.allclose(out2, ref2, atol=1e-5, rtol=1e-5)

    print("KERNEL_OK")
</pallas_src>

<mosaic_0001>
module attributes {stable_mosaic.version = 11 : i64} {
  func.func @_decoder_kernel(%arg0: i32, %arg1: i32, %arg2: i32, %arg3: memref<16x32xbf16, #tpu.memory_space<vmem>>, %arg4: memref<128x32xbf16, #tpu.memory_space<vmem>>, %arg5: memref<1x128xf32, #tpu.memory_space<vmem>>, %arg6: memref<16x128xf32, #tpu.memory_space<vmem>>, %arg7: memref<16x128xf32, #tpu.memory_space<vmem>>) attributes {dimension_semantics = [#tpu.dimension_semantics<parallel>, #tpu.dimension_semantics<arbitrary>, #tpu.dimension_semantics<arbitrary>], iteration_bounds = array<i64: 1, 1, 1>, scalar_prefetch = 0 : i64, scratch_operands = 1 : i64, tpu.core_type = #tpu.core_type<tc>, window_params = [{transform_indices = @transform_0, window_bounds = array<i64: 16, 32>}, {transform_indices = @transform_1, window_bounds = array<i64: 128, 32>}, {transform_indices = @transform_2, window_bounds = array<i64: 1, 128>}, {transform_indices = @transform_3, window_bounds = array<i64: 16, 128>}]} {
    %c0_i32 = arith.constant 0 : i32
    %0 = arith.cmpi eq, %arg2, %c0_i32 : i32
    %1 = arith.extui %0 : i1 to i32
    %c0_i32_0 = arith.constant 0 : i32
    %2 = arith.cmpi ne, %1, %c0_i32_0 : i32
    scf.if %2 {
      %cst_10 = arith.constant 0.000000e+00 : f32
      %12 = vector.broadcast %cst_10 : f32 to vector<16x128xf32>
      %c0_11 = arith.constant 0 : index
      %c0_12 = arith.constant 0 : index
      %13 = vector.load %arg7[%c0_11, %c0_12] : memref<16x128xf32, #tpu.memory_space<vmem>>, vector<16x128xf32>
      tpu.vector_store %arg7[%c0_11, %c0_12], %12 {strides = array<i32>} : memref<16x128xf32, #tpu.memory_space<vmem>>, vector<16x128xf32>,
    } else {
    }
    %c0 = arith.constant 0 : index
    %c0_1 = arith.constant 0 : index
    %3 = vector.load %arg7[%c0, %c0_1] : memref<16x128xf32, #tpu.memory_space<vmem>>, vector<16x128xf32>
    %c0_2 = arith.constant 0 : index
    %c0_3 = arith.constant 0 : index
    %4 = vector.load %arg3[%c0_2, %c0_3] : memref<16x32xbf16, #tpu.memory_space<vmem>>, vector<16x32xbf16>
    %c0_4 = arith.constant 0 : index
    %c0_5 = arith.constant 0 : index
    %5 = vector.load %arg4[%c0_4, %c0_5] : memref<128x32xbf16, #tpu.memory_space<vmem>>, vector<128x32xbf16>
    %cst = arith.constant dense<0.000000e+00> : vector<16x128xf32>
    %6 = tpu.matmul %4, %5, %cst {dimension_numbers = #tpu.dot_dimension_numbers<[1], [1], [0], [0], [0, 0, 1, 0], [], []>} : vector<16x32xbf16>, vector<128x32xbf16>, vector<16x128xf32> -> vector<16x128xf32>
    %7 = arith.addf %3, %6 : vector<16x128xf32>
    %c0_6 = arith.constant 0 : index
    %c0_7 = arith.constant 0 : index
    %8 = vector.load %arg7[%c0_6, %c0_7] : memref<16x128xf32, #tpu.memory_space<vmem>>, vector<16x128xf32>
    tpu.vector_store %arg7[%c0_6, %c0_7], %7 {strides = array<i32>} : memref<16x128xf32, #tpu.memory_space<vmem>>, vector<16x128xf32>,
    %c0_i32_8 = arith.constant 0 : i32
    %9 = arith.cmpi eq, %arg2, %c0_i32_8 : i32
    %10 = arith.extui %9 : i1 to i32
    %c0_i32_9 = arith.constant 0 : i32
    %11 = arith.cmpi ne, %10, %c0_i32_9 : i32
    scf.if %11 {
      %c0_10 = arith.constant 0 : index
      %c0_11 = arith.constant 0 : index
      %12 = vector.load %arg7[%c0_10, %c0_11] : memref<16x128xf32, #tpu.memory_space<vmem>>, vector<16x128xf32>
      %c0_12 = arith.constant 0 : index
      %c0_13 = arith.constant 0 : index
      %13 = vector.load %arg5[%c0_12, %c0_13] : memref<1x128xf32, #tpu.memory_space<vmem>>, vector<1x128xf32>
      %14 = vector.broadcast %13 : vector<1x128xf32> to vector<16x128xf32>
      %15 = arith.addf %12, %14 : vector<16x128xf32>
      %c0_14 = arith.constant 0 : index
      %c0_15 = arith.constant 0 : index
      %16 = vector.load %arg6[%c0_14, %c0_15] : memref<16x128xf32, #tpu.memory_space<vmem>>, vector<16x128xf32>
      tpu.vector_store %arg6[%c0_14, %c0_15], %15 {strides = array<i32>} : memref<16x128xf32, #tpu.memory_space<vmem>>, vector<16x128xf32>,
    } else {
    }
    return
  }
  func.func @transform_0(%arg0: i32, %arg1: i32, %arg2: i32) -> (i32, i32) {
    %c0_i32 = arith.constant 0 : i32
    return %arg1, %arg2 : i32, i32
  }
  func.func @transform_1(%arg0: i32, %arg1: i32, %arg2: i32) -> (i32, i32) {
    %c0_i32 = arith.constant 0 : i32
    return %arg0, %arg2 : i32, i32
  }
  func.func @transform_2(%arg0: i32, %arg1: i32, %arg2: i32) -> (i32, i32) {
    %c0_i32 = arith.constant 0 : i32
    %c0_i32_0 = arith.constant 0 : i32
    return %c0_i32, %arg0 : i32, i32
  }
  func.func @transform_3(%arg0: i32, %arg1: i32, %arg2: i32) -> (i32, i32) {
    %c0_i32 = arith.constant 0 : i32
    return %arg1, %arg0 : i32, i32
  }
}

</mosaic_0001>

<bundles_post_ra>
// kernel: tpu_custom_call.1
= control target key start
LH: loop header
LB: loop body
LE: loop exit
PB: predicated region body
PF: predicated region fallthrough
CT: control target
= control target key end

     0   :  { %v268_v1 = vmov 0.0   ;;  %vm87_vm0 = vcmask 261120   ;;  %vm269_vm1 = vmmov 0   ;;  %s335_s0 = inlined_call_operand.vmem [shape: bf16[16,32], index: 0, kind: input, shape index: {}]   ;;  %s336_s1 = inlined_call_operand.vmem [shape: bf16[128,32], index: 1, kind: input, shape index: {}]   ;;  %s337_s2 = inlined_call_operand.vmem [shape: f32[1,128], index: 2, kind: input, shape index: {}]   ;;  %s338_s3 = inlined_call_operand.hbm [shape: f32[16,128], index: 3, kind: output, shape index: {}]  }
   0x1   :  { %v237_v0 = vld [vmem:[%s336_s1 + $0x38] sm:$0xff]   ;;  %212 = vmatprep.subr.bf16.mxu0 %v268_v1  ;;  %v238_v3 = vld [vmem:[%s336_s1 + $0x30] sm:$0xff]   ;;  %228 = vmatprep.mubr.msk.bf16.mxu0 %vm269_vm1, %v268_v1 }
   0x2   :  { %v113_v2 = vsel %vm87_vm0, %v237_v0, 0  ;;  %v110_v4 = vsel %vm87_vm0, %v238_v3, 0 }
   0x3   :  { %213 = vmatpush3.bf16.xpose.msra.mxu0 %v113_v2 }
   0x4   :  { %214 = vmatprep.subr.bf16.mxu0 %v268_v1 }
   0x5   :  { %8 = vsyncpa [#allocation4], 0  ;;  %v239_v5 = vld [vmem:[%s336_s1 + $0x28] sm:$0xff]   ;;  %v240_v7 = vld [vmem:[%s336_s1 + $0x20] sm:$0xff]   ;;  %s270_s5 = smov [#allocation3]  }
   0x6   :  { %v107_v6 = vsel %vm87_vm0, %v239_v5, 0  ;;  %v104_v8 = vsel %vm87_vm0, %v240_v7, 0  ;;  %v241_v9 = vld [vmem:[%s336_s1 + $0x18] sm:$0xff]   ;;  %v242_v11 = vld [vmem:[%s336_s1 + $0x10] sm:$0xff]   ;;  %v243_v13 = vld [vmem:[%s336_s1 + $0x8] sm:$0xff]   ;;  %s181_s6 = sshll.u32 %s270_s5, 4  ;;  %s182_s6 = int_to_ptr.vmem [resolvable:$true] %s181_s6 }
   0x7   :  { %v101_v10 = vsel %vm87_vm0, %v241_v9, 0  ;;  %v98_v12 = vsel %vm87_vm0, %v242_v11, 0  ;;  %v95_v14 = vsel %vm87_vm0, %v243_v13, 0  ;;  %v244_v15 = vld [vmem:[%s336_s1] sm:$0xff]   ;;  %s246_s1 = scalar_lea.vmem %s182_s6, 256  ;;  %p251_p1 = scmp.lt.s32.totalorder %s182_s6, %s182_s6 }
   0x8   :  { %v92_v16 = vsel %vm87_vm0, %v244_v15, 0  ;;  %v245_v17 = vld [vmem:[%s335_s0] sm:$0xff]   ;;  %p247_p0 = scmp.ne.s32.totalorder %s182_s6, %s246_s1  ;;  %p252_p2 = scmp.lt.s32.totalorder %s246_s1, %s246_s1 }
   0x9   :  { %v202_v18 = vld [vmem:[%s337_s2] ss:$0 sm:$0xff] }
   0xa   :  { %p253_p3 = por %p252_p2, %p251_p1 }
   0xb   :  { %215 = vmatpush3.bf16.xpose.msra.mxu0 %v110_v4 }
   0xc   :  { %216 = vmatprep.subr.bf16.mxu0 %v268_v1  ;;  %p254_p4 = pnand %p253_p3, %p247_p0 }
  0x13   :  { %217 = vmatpush3.bf16.xpose.msra.mxu0 %v107_v6 }
  0x14   :  { %218 = vmatprep.subr.bf16.mxu0 %v268_v1 }
  0x1b   :  { %219 = vmatpush3.bf16.xpose.msra.mxu0 %v104_v8 }
  0x1c   :  { %220 = vmatprep.subr.bf16.mxu0 %v268_v1 }
  0x23   :  { %221 = vmatpush3.bf16.xpose.msra.mxu0 %v101_v10 }
  0x24   :  { %222 = vmatprep.subr.bf16.mxu0 %v268_v1 }
  0x2b   :  { %223 = vmatpush3.bf16.xpose.msra.mxu0 %v98_v12 }
  0x2c   :  { %224 = vmatprep.subr.bf16.mxu0 %v268_v1 }
  0x33   :  { %225 = vmatpush3.bf16.xpose.msra.mxu0 %v95_v14 }
  0x34   :  { %226 = vmatprep.subr.bf16.mxu0 %v268_v1 }
  0x3b   :  { %227 = vmatpush3.bf16.xpose.msra.mxu0 %v92_v16 }
  0x42   :  { %229 = vmatmul.mubr.msk.bf16.vlgmr.msra.gmra.mxu0 %vm87_vm0, %v245_v17 }
 0x102   :  { %v149_v19 = vpop.f32.mrf.mxu0 }
 0x103   :  { %v172_v20 = vadd.f32 %v202_v18, %v149_v19 }
 0x104   :  { %v230_v21 = vpop.f32.mrf.mxu0 }
 0x105   :  { %174 = vst [vmem:[#allocation3] sm:$0xff] %v172_v20 }
 0x106   :  { %v152_v22 = vpop.f32.mrf.mxu0 }
 0x107   :  { %v173_v23 = vadd.f32 %v202_v18, %v152_v22 }
 0x108   :  { %v231_v24 = vpop.f32.mrf.mxu0 }
 0x109   :  { %175 = vst [vmem:[#allocation3 + $0x8] sm:$0xff] %v173_v23 }
 0x10a   :  { %257 = shalt.err (!%p254_p4)
}
 0x10b   :  { %s271_s0 = smov 128   ;;  %s272_s2 = smov 8  }
 0x10c   :  { %187 = dma.vmem_to_hbm [thread:$0]  %s182_s6, 256, %s338_s3, [#allocation4], %s271_s0, %s271_s0, %s272_s2  }
 0x10d   :  { %266 = dma.done.wait [#allocation4], 256  }
 0x10e   :  { %267 = vsyncadd [#allocation4], 4294967040 }
 0x10f   :  { %191 = vsyncpa [#allocation4], 1 }

</bundles_post_ra>
